<compile_context>
chip_gen: v5e
topology: v5e:2x2
jax: 0.10.0
libtpu: 0.0.40
codegen_flags: <defaults>
</compile_context>

<pallas_src>
import jax
import jax.numpy as jnp
from jax.experimental import pallas as pl
from jax.experimental.pallas import tpu as pltpu

HIDDEN = 128


def discriminator_kernel(x_ref, w1_ref, b1_ref, w2_ref, b2_ref, o_ref):
    # Layer 1: bf16 x bf16 -> f32 accumulate on the MXU.
    h = jnp.dot(x_ref[...], w1_ref[...],
                preferred_element_type=jnp.float32)          # (TILE_B, 128) f32
    h = h + b1_ref[...]                                      # bias (1, 128) f32
    h = jnp.where(h >= 0, h, 0.01 * h)                       # LeakyReLU(0.01), f32 VPU

    # Layer 2: (TILE_B,128) x (128,1) as VPU mul + XLU reduce (MXU-free).
    y = jnp.sum(h * w2_ref[...], axis=-1, keepdims=True)     # (TILE_B, 1) f32
    y = y + b2_ref[0, 0]                                     # scalar bias from SMEM

    # Sigmoid via EUP exp + approximate reciprocal (no VPU divide).
    o_ref[...] = pl.reciprocal(1.0 + jnp.exp(-y), approx=True)


def discriminator_forward(x, w1, b1, w2, b2, *, tile_b=1024):
    """x: (B, F) f32; w1: (F, 128); b1: (1, 128); w2: (1, 128) [= W2 row]; b2: (1, 1)."""
    B, F = x.shape

    # Pick a batch tile: big enough to amortize per-step overhead, small enough
    # to double-buffer comfortably inside v7x's 32 MiB scoped VMEM.
    tile_b = min(tile_b, B)
    if tile_b != B and tile_b % 8 != 0:
        tile_b = B  # fall back to a single full block (satisfies (8,128) rule)

    # bf16 matmul operands; everything else stays f32.
    x_bf16 = x.astype(jnp.bfloat16)
    w1_bf16 = w1.astype(jnp.bfloat16)

    grid = (pl.cdiv(B, tile_b),)

    cost = pl.CostEstimate(
        flops=2 * B * F * HIDDEN + 4 * B * HIDDEN,
        transcendentals=B,
        bytes_accessed=B * F * 2 + B * 4 + F * HIDDEN * 2 + HIDDEN * 8 + 4,
    )

    return pl.pallas_call(
        discriminator_kernel,
        out_shape=jax.ShapeDtypeStruct((B, 1), jnp.float32),
        grid=grid,
        in_specs=[
            pl.BlockSpec((tile_b, F), lambda i: (i, 0)),          # x: streamed
            pl.BlockSpec((F, HIDDEN), lambda i: (0, 0)),          # w1: resident
            pl.BlockSpec((1, HIDDEN), lambda i: (0, 0)),          # b1: resident
            pl.BlockSpec((1, HIDDEN), lambda i: (0, 0)),          # w2 row: resident
            pl.BlockSpec(memory_space=pltpu.MemorySpace.SMEM),    # b2: scalar in SMEM
        ],
        out_specs=pl.BlockSpec((tile_b, 1), lambda i: (i, 0)),
        compiler_params=pltpu.CompilerParams(
            dimension_semantics=("parallel",),
        ),
        cost_estimate=cost,
    )(x_bf16, w1_bf16, b1, w2, b2)


def init_params(key, in_features, hidden=HIDDEN, out_features=1):
    """Deterministic synthetic params (PyTorch-Linear-like uniform init)."""
    k1, k2, k3, k4 = jax.random.split(key, 4)
    lim1 = 1.0 / jnp.sqrt(in_features)
    lim2 = 1.0 / jnp.sqrt(hidden)
    # Stored already transposed for the kernel: w1 is (in, hidden); w2 is kept
    # as a (1, hidden) row so the kernel does a broadcast-multiply + reduce.
    w1 = jax.random.uniform(k1, (in_features, hidden), jnp.float32, -lim1, lim1)
    b1 = jax.random.uniform(k2, (1, hidden), jnp.float32, -lim1, lim1)
    w2 = jax.random.uniform(k3, (out_features, hidden), jnp.float32, -lim2, lim2)
    b2 = jax.random.uniform(k4, (1, out_features), jnp.float32, -lim2, lim2)
    return w1, b1, w2, b2


def reference_forward(x, w1, b1, w2, b2):
    h = x @ w1 + b1
    h = jnp.where(h >= 0, h, 0.01 * h)
    y = h @ w2.T + b2
    return jax.nn.sigmoid(y)


if __name__ == "__main__":
    key = jax.random.PRNGKey(0)
    k_x, k_p = jax.random.split(key)

    batch, in_features = 256, 64
    x = jax.random.normal(k_x, (batch, in_features), jnp.float32)
    w1, b1, w2, b2 = init_params(k_p, in_features)

    # tile_b=128 -> grid of 2 so the pipelined/tiled path is exercised.
    out = discriminator_forward(x, w1, b1, w2, b2, tile_b=128)
    out = jax.block_until_ready(out)

    ref = reference_forward(x, w1, b1, w2, b2)
    assert out.shape == (batch, 1)
    # bf16 matmul operands + approx reciprocal -> loosened tolerance vs f32 ref.
    assert jnp.allclose(out, ref, atol=2e-2, rtol=2e-2)
    assert bool(jnp.all((out >= 0.0) & (out <= 1.0)))

    print("KERNEL_OK")
</pallas_src>

<mosaic_0001>
module attributes {stable_mosaic.version = 11 : i64} {
  func.func @discriminator_kernel(%arg0: i32, %arg1: memref<128x64xbf16, #tpu.memory_space<vmem>>, %arg2: memref<64x128xbf16, #tpu.memory_space<vmem>>, %arg3: memref<1x128xf32, #tpu.memory_space<vmem>>, %arg4: memref<1x128xf32, #tpu.memory_space<vmem>>, %arg5: memref<1x1xf32, #tpu.memory_space<smem>>, %arg6: memref<128x1xf32, #tpu.memory_space<vmem>>) attributes {dimension_semantics = [#tpu.dimension_semantics<parallel>], iteration_bounds = array<i64: 2>, scalar_prefetch = 0 : i64, scratch_operands = 0 : i64, tpu.core_type = #tpu.core_type<tc>, window_params = [{transform_indices = @transform_0, window_bounds = array<i64: 128, 64>}, {pipeline_mode = #tpu.pipeline_mode<synchronous>, transform_indices = @transform_1, window_bounds = array<i64: 64, 128>}, {pipeline_mode = #tpu.pipeline_mode<synchronous>, transform_indices = @transform_2, window_bounds = array<i64: 1, 128>}, {pipeline_mode = #tpu.pipeline_mode<synchronous>, transform_indices = @transform_3, window_bounds = array<i64: 1, 128>}, {transform_indices = @transform_4, window_bounds = array<i64: 1, 1>}, {transform_indices = @transform_5, window_bounds = array<i64: 128, 1>}]} {
    %c0 = arith.constant 0 : index
    %c0_0 = arith.constant 0 : index
    %0 = vector.load %arg1[%c0, %c0_0] : memref<128x64xbf16, #tpu.memory_space<vmem>>, vector<128x64xbf16>
    %c0_1 = arith.constant 0 : index
    %c0_2 = arith.constant 0 : index
    %1 = vector.load %arg2[%c0_1, %c0_2] : memref<64x128xbf16, #tpu.memory_space<vmem>>, vector<64x128xbf16>
    %cst = arith.constant dense<0.000000e+00> : vector<128x128xf32>
    %2 = tpu.matmul %0, %1, %cst {dimension_numbers = #tpu.dot_dimension_numbers<[1], [0], [0], [1], [0, 0, 1, 1], [], []>} : vector<128x64xbf16>, vector<64x128xbf16>, vector<128x128xf32> -> vector<128x128xf32>
    %c0_3 = arith.constant 0 : index
    %c0_4 = arith.constant 0 : index
    %3 = vector.load %arg3[%c0_3, %c0_4] : memref<1x128xf32, #tpu.memory_space<vmem>>, vector<1x128xf32>
    %4 = vector.broadcast %3 : vector<1x128xf32> to vector<128x128xf32>
    %5 = arith.addf %2, %4 : vector<128x128xf32>
    %cst_5 = arith.constant 0.000000e+00 : f32
    %6 = vector.broadcast %cst_5 : f32 to vector<128x128xf32>
    %7 = arith.cmpf oge, %5, %6 : vector<128x128xf32>
    %cst_6 = arith.constant 0.00999999977 : f32
    %8 = vector.broadcast %cst_6 : f32 to vector<128x128xf32>
    %9 = arith.mulf %8, %5 : vector<128x128xf32>
    %10 = arith.select %7, %5, %9 : vector<128x128xi1>, vector<128x128xf32>
    %c0_7 = arith.constant 0 : index
    %c0_8 = arith.constant 0 : index
    %11 = vector.load %arg4[%c0_7, %c0_8] : memref<1x128xf32, #tpu.memory_space<vmem>>, vector<1x128xf32>
    %12 = vector.broadcast %11 : vector<1x128xf32> to vector<128x128xf32>
    %13 = arith.mulf %10, %12 : vector<128x128xf32>
    %cst_9 = arith.constant dense<0.000000e+00> : vector<128xf32>
    %14 = vector.multi_reduction <add>, %13, %cst_9 [1] : vector<128x128xf32> to vector<128xf32>
    %15 = vector.shape_cast %14 : vector<128xf32> to vector<128x1xf32>
    %c0_10 = arith.constant 0 : index
    %c0_11 = arith.constant 0 : index
    %16 = memref.load %arg5[%c0_10, %c0_11] : memref<1x1xf32, #tpu.memory_space<smem>>
    %17 = vector.broadcast %16 : f32 to vector<128x1xf32>
    %18 = arith.addf %15, %17 : vector<128x1xf32>
    %cst_12 = arith.constant 0.000000e+00 : f32
    %19 = vector.broadcast %cst_12 : f32 to vector<128x1xf32>
    %20 = arith.subf %19, %18 : vector<128x1xf32>
    %21 = math.exp %20 : vector<128x1xf32>
    %cst_13 = arith.constant 1.000000e+00 : f32
    %22 = vector.broadcast %cst_13 : f32 to vector<128x1xf32>
    %23 = arith.addf %22, %21 : vector<128x1xf32>
    %24 = tpu.reciprocal %23 {approx = true} : vector<128x1xf32> -> vector<128x1xf32>
    %c0_14 = arith.constant 0 : index
    %c0_15 = arith.constant 0 : index
    %25 = vector.load %arg6[%c0_14, %c0_15] : memref<128x1xf32, #tpu.memory_space<vmem>>, vector<128x1xf32>
    tpu.vector_store %arg6[%c0_14, %c0_15], %24 {strides = array<i32>} : memref<128x1xf32, #tpu.memory_space<vmem>>, vector<128x1xf32>,
    return
  }
  func.func @transform_0(%arg0: i32) -> (i32, i32) {
    %c0_i32 = arith.constant 0 : i32
    %c0_i32_0 = arith.constant 0 : i32
    return %arg0, %c0_i32 : i32, i32
  }
  func.func @transform_1(%arg0: i32) -> (i32, i32) {
    %c0_i32 = arith.constant 0 : i32
    %c0_i32_0 = arith.constant 0 : i32
    %c0_i32_1 = arith.constant 0 : i32
    return %c0_i32, %c0_i32_0 : i32, i32
  }
  func.func @transform_2(%arg0: i32) -> (i32, i32) {
    %c0_i32 = arith.constant 0 : i32
    %c0_i32_0 = arith.constant 0 : i32
    %c0_i32_1 = arith.constant 0 : i32
    return %c0_i32, %c0_i32_0 : i32, i32
  }
  func.func @transform_3(%arg0: i32) -> (i32, i32) {
    %c0_i32 = arith.constant 0 : i32
    %c0_i32_0 = arith.constant 0 : i32
    %c0_i32_1 = arith.constant 0 : i32
    return %c0_i32, %c0_i32_0 : i32, i32
  }
  func.func @transform_4(%arg0: i32) -> (i32, i32) {
    %c0_i32 = arith.constant 0 : i32
    %c0_i32_0 = arith.constant 0 : i32
    %c0_i32_1 = arith.constant 0 : i32
    return %c0_i32, %c0_i32_0 : i32, i32
  }
  func.func @transform_5(%arg0: i32) -> (i32, i32) {
    %c0_i32 = arith.constant 0 : i32
    %c0_i32_0 = arith.constant 0 : i32
    return %arg0, %c0_i32 : i32, i32
  }
}

</mosaic_0001>

<bundles_post_ra>
// kernel: tpu_custom_call.1
= control target key start
LH: loop header
LB: loop body
LE: loop exit
PB: predicated region body
PF: predicated region fallthrough
CT: control target
= control target key end

     0   :  { %s873_s20 = smov 0   ;;  %s1011_s0 = inlined_call_operand.vmem [shape: bf16[256,64], index: 0, kind: input, shape index: {}]   ;;  %s1012_s1 = inlined_call_operand.vmem [shape: bf16[64,128], index: 1, kind: input, shape index: {}]   ;;  %s1013_s2 = inlined_call_operand.vmem [shape: f32[1,128], index: 2, kind: input, shape index: {}]   ;;  %s1014_s3 = inlined_call_operand.vmem [shape: f32[1,128], index: 3, kind: input, shape index: {}]   ;;  %s1015_s4 = inlined_call_operand.<no memory space> [shape: f32[1,1], index: 4, kind: input, shape index: {}]   ;;  %s1016_s5 = inlined_call_operand.vmem [shape: f32[256,1], index: 5, kind: output, shape index: {}]  }
   0x1   :  { %10 = sst [smem:[#allocation2]] %s1015_s4 }
   0x2 LB: > { %s667_s21 = sadd.s32 4294967295, %s838_s20   ;;  %p671_p0 = scmp.ge.s32.totalorder %s838_s20, 1  ;;  %s838_s20 = sphi %s873_s20, %s16_s20  }
   0x3   : > { %p189_p1 = scmp.lt.s32.totalorder %s838_s20, 3 }
   0x5   : > { %p190_p2 = pnand %p671_p0, %p189_p1 }
   0x6   : > { %s672_s4 = sshll.u32 (!%p190_p2), %s667_s21, 4  ;;  %s496_s13 = sld [smem:[#allocation2]] (!%p190_p2) }
   0x7   : > { %193 = sbr.rel (%p190_p2) target bundleno = 349 (0x15d), region = 40  ;;  %p218_p3 = scmp.lt.s32.totalorder (!%p190_p2), %s672_s4, 31 }
   0xc   : > { %v745_v0 = vld [vmem:[%s1012_s1 + $0x18] sm:$0xff]  ;;  %v744_v1 = vld [vmem:[%s1012_s1 + $0x10] sm:$0xff]  ;;  %s1018_s4 = smov (!%p218_p3, %s672_s4), 31  ;;  %v743_v2 = vld [vmem:[%s1012_s1 + $0x8] sm:$0xff]  ;;  %vm322_vm0 = vcmask 523264  }
   0xd   : > { %351 = vmatpush.bf16.msra.mxu0 %v745_v0  ;;  %746 = vmatpush.bf16.msra.mxu1 %v745_v0  ;;  %s673_s28 = sshll.u32 %s1018_s4, 2  ;;  %v742_v3 = vld [vmem:[%s1012_s1] sm:$0xff]  ;;  %s675_s14 = sshll.u32 %s1018_s4, 3 }
   0xe   : > { %747 = vmatpush.bf16.msra.mxu2 %v745_v0  ;;  %748 = vmatpush.bf16.msra.mxu3 %v745_v0  ;;  %s221_s8 = scalar_lea.vmem %s1011_s0, %s673_s28  ;;  %v910_v12 = vld [vmem:[%s1013_s2] ss:$0 sm:$0xff]  ;;  %s965_s17 = scalar_lea.vmem %s1016_s5, %s675_s14 }
   0xf   : > { %v734_v4 = vld [vmem:[%s221_s8] sm:$0xff]  ;;  %v736_v5 = vld [vmem:[%s221_s8 + $0x10] sm:$0xff]  ;;  %v735_v8 = vld [vmem:[%s221_s8 + $0x8] sm:$0xff] }
  0x10   : > { %v738_v6 = vld [vmem:[%s221_s8 + $0x20] sm:$0xff]  ;;  %v740_v7 = vld [vmem:[%s221_s8 + $0x30] sm:$0xff]  ;;  %v737_v9 = vld [vmem:[%s221_s8 + $0x18] sm:$0xff] }
  0x11   : > { %352 = vmatpush.bf16.msra.mxu0 %v744_v1  ;;  %749 = vmatpush.bf16.msra.mxu1 %v744_v1  ;;  %v739_v10 = vld [vmem:[%s221_s8 + $0x28] sm:$0xff]  ;;  %v741_v11 = vld [vmem:[%s221_s8 + $0x38] sm:$0xff]  ;;  %v917_v17 = vld [vmem:[%s1014_s3] ss:$0 sm:$0xff] }
  0x12   : > { %750 = vmatpush.bf16.msra.mxu2 %v744_v1  ;;  %751 = vmatpush.bf16.msra.mxu3 %v744_v1 }
  0x15   : > { %353 = vmatpush.bf16.msra.mxu0 %v743_v2  ;;  %752 = vmatpush.bf16.msra.mxu1 %v743_v2 }
  0x16   : > { %753 = vmatpush.bf16.msra.mxu2 %v743_v2  ;;  %754 = vmatpush.bf16.msra.mxu3 %v743_v2 }
  0x19   : > { %354 = vmatpush.bf16.msra.mxu0 %v742_v3  ;;  %755 = vmatpush.bf16.msra.mxu1 %v742_v3 }
  0x1a   : > { %756 = vmatpush.bf16.msra.mxu2 %v742_v3  ;;  %757 = vmatpush.bf16.msra.mxu3 %v742_v3 }
  0x1c   : > { %724 = vmatmul.msk.bf16.vlgmr.msra.gmra.mxu0 %vm322_vm0, %v734_v4  ;;  %726 = vmatmul.msk.bf16.vlgmr.msra.gmra.mxu1 %vm322_vm0, %v736_v5 }
  0x1d   : > { %728 = vmatmul.msk.bf16.vlgmr.msra.gmra.mxu2 %vm322_vm0, %v738_v6  ;;  %730 = vmatmul.msk.bf16.vlgmr.msra.gmra.mxu3 %vm322_vm0, %v740_v7 }
  0x2c   : > { %725 = vmatmul.msk.bf16.gmra.mxu0 %vm322_vm0, %v735_v8  ;;  %727 = vmatmul.msk.bf16.gmra.mxu1 %vm322_vm0, %v737_v9 }
  0x2d   : > { %729 = vmatmul.msk.bf16.gmra.mxu2 %vm322_vm0, %v739_v10  ;;  %731 = vmatmul.msk.bf16.gmra.mxu3 %vm322_vm0, %v741_v11 }
  0x99   : > { %v356_v13 = vpop.f32.mrf.mxu0  ;;  %v366_v14 = vpop.f32.mrf.mxu1 }
  0x9a   : > { %v357_v15 = vadd.f32 %v910_v12, %v356_v13  ;;  %v367_v16 = vadd.f32 %v910_v12, %v366_v14 }
  0x9c   : > { %v412_v18 = vmul.f32 0.01, %v357_v15  ;;  %v416_v19 = vmul.f32 0.01, %v367_v16  ;;  %vm400_vm1 = vcmp.ge.f32.partialorder %v367_v16, 0.0  ;;  %vm396_vm2 = vcmp.ge.f32.partialorder %v357_v15, 0.0 }
  0x9e   : > { %v432_v20 = vsel %vm400_vm1, %v367_v16, %v416_v19  ;;  %v428_v21 = vsel %vm396_vm2, %v357_v15, %v412_v18  ;;  %vm594_vm1 = vcmask 7168  }
  0x9f   : > { %v452_v22 = vmul.f32 %v917_v17, %v432_v20  ;;  %v448_v23 = vmul.f32 %v917_v17, %v428_v21 }
  0xa0   : > { %v376_v24 = vpop.f32.mrf.mxu2  ;;  %v386_v25 = vpop.f32.mrf.mxu3 }
  0xa1   : > { %v377_v26 = vadd.f32 %v910_v12, %v376_v24  ;;  %v387_v27 = vadd.f32 %v910_v12, %v386_v25  ;;  %472 = vadd.xlane.f32.xlu2 %v452_v22  ;;  %v358_v28 = vpop.f32.mrf.mxu0  ;;  %464 = vadd.xlane.f32.xlu0 %v448_v23  ;;  %v368_v29 = vpop.f32.mrf.mxu1 }
  0xa2   : > { %v369_v32 = vadd.f32 %v910_v12, %v368_v29  ;;  %v359_v33 = vadd.f32 %v910_v12, %v358_v28 }
  0xa3   : > { %v420_v30 = vmul.f32 0.01, %v377_v26  ;;  %v424_v31 = vmul.f32 0.01, %v387_v27  ;;  %vm404_vm3 = vcmp.ge.f32.partialorder %v377_v26, 0.0  ;;  %vm408_vm4 = vcmp.ge.f32.partialorder %v387_v27, 0.0 }
  0xa4   : > { %v417_v38 = vmul.f32 0.01, %v369_v32  ;;  %v413_v41 = vmul.f32 0.01, %v359_v33  ;;  %vm401_vm5 = vcmp.ge.f32.partialorder %v369_v32, 0.0  ;;  %vm397_vm6 = vcmp.ge.f32.partialorder %v359_v33, 0.0 }
  0xa5   : > { %v436_v34 = vsel %vm404_vm3, %v377_v26, %v420_v30  ;;  %v440_v35 = vsel %vm408_vm4, %v387_v27, %v424_v31 }
  0xa6   : > { %v460_v36 = vmul.f32 %v917_v17, %v440_v35  ;;  %v456_v37 = vmul.f32 %v917_v17, %v436_v34  ;;  %v433_v45 = vsel %vm401_vm5, %v369_v32, %v417_v38  ;;  %v429_v47 = vsel %vm397_vm6, %v359_v33, %v413_v41 }
  0xa7   : > { %v453_v50 = vmul.f32 %v917_v17, %v433_v45  ;;  %v449_v53 = vmul.f32 %v917_v17, %v429_v47  ;;  %v952_v32 = vstv %s496_s13 }
  0xa8   : > { %v378_v39 = vpop.f32.mrf.mxu2  ;;  %v927_v40 = vpop.f32.mrf.mxu3 }
  0xa9   : > { %480 = vadd.xlane.f32.xlu2 %v456_v37  ;;  %v361_v42 = vpop.f32.mrf.mxu0  ;;  %488 = vadd.xlane.f32.xlu0 %v460_v36  ;;  %v379_v46 = vadd.f32 %v910_v12, %v378_v39  ;;  %v371_v49 = vpop.f32.mrf.mxu1  ;;  %v389_v23 = vadd.f32 %v910_v12, %v927_v40 }
  0xaa   : > { %v362_v43 = vadd.f32 %v910_v12, %v361_v42  ;;  %v372_v60 = vadd.f32 %v910_v12, %v371_v49 }
  0xab   : > { %v421_v55 = vmul.f32 0.01, %v379_v46  ;;  %vm405_vm8 = vcmp.ge.f32.partialorder %v379_v46, 0.0  ;;  %v425_v28 = vmul.f32 0.01, %v389_v23  ;;  %vm409_vm0 = vcmp.ge.f32.partialorder %v389_v23, 0.0 }
  0xac   : > { %v414_v44 = vmul.f32 0.01, %v362_v43  ;;  %vm398_vm7 = vcmp.ge.f32.partialorder %v362_v43, 0.0  ;;  %v418_v3 = vmul.f32 0.01, %v372_v60  ;;  %vm402_vm11 = vcmp.ge.f32.partialorder %v372_v60, 0.0 }
  0xad   : > { %v437_v62 = vsel %vm405_vm8, %v379_v46, %v421_v55  ;;  %v441_v30 = vsel %vm409_vm0, %v389_v23, %v425_v28 }
  0xae   : > { %v430_v48 = vsel %vm398_vm7, %v362_v43, %v414_v44  ;;  %v457_v2 = vmul.f32 %v917_v17, %v437_v62  ;;  %v434_v15 = vsel %vm402_vm11, %v372_v60, %v418_v3  ;;  %v461_v31 = vmul.f32 %v917_v17, %v441_v30 }
  0xaf   : > { %v450_v51 = vmul.f32 %v917_v17, %v430_v48  ;;  %v454_v20 = vmul.f32 %v917_v17, %v434_v15 }
  0xb0   : > { %v381_v52 = vpop.f32.mrf.mxu2  ;;  %v391_v54 = vpop.f32.mrf.mxu3 }
  0xb1   : > { %v382_v56 = vadd.f32 %v910_v12, %v381_v52  ;;  %474 = vadd.xlane.f32.xlu2 %v453_v50  ;;  %v363_v57 = vpop.f32.mrf.mxu0  ;;  %468 = vadd.xlane.f32.xlu1 %v450_v51  ;;  %v373_v4 = vpop.f32.mrf.mxu1  ;;  %v392_v6 = vadd.f32 %v910_v12, %v391_v54 }
  0xb2   : > { %466 = vadd.xlane.f32.xlu0 %v449_v53  ;;  %v364_v59 = vadd.f32 %v910_v12, %v363_v57  ;;  %v374_v9 = vadd.f32 %v910_v12, %v373_v4 }
  0xb3   : > { %v422_v58 = vmul.f32 0.01, %v382_v56  ;;  %vm406_vm9 = vcmp.ge.f32.partialorder %v382_v56, 0.0  ;;  %v426_v11 = vmul.f32 0.01, %v392_v6  ;;  %vm410_vm13 = vcmp.ge.f32.partialorder %v392_v6, 0.0 }
  0xb4   : > { %v415_v0 = vmul.f32 0.01, %v364_v59  ;;  %vm399_vm10 = vcmp.ge.f32.partialorder %v364_v59, 0.0  ;;  %v419_v19 = vmul.f32 0.01, %v374_v9  ;;  %vm403_vm14 = vcmp.ge.f32.partialorder %v374_v9, 0.0 }
  0xb5   : > { %v438_v61 = vsel %vm406_vm9, %v382_v56, %v422_v58  ;;  %v442_v22 = vsel %vm410_vm13, %v392_v6, %v426_v11 }
  0xb6   : > { %v458_v63 = vmul.f32 %v917_v17, %v438_v61  ;;  %v431_v10 = vsel %vm399_vm10, %v364_v59, %v415_v0  ;;  %v462_v24 = vmul.f32 %v917_v17, %v442_v22  ;;  %v435_v25 = vsel %vm403_vm14, %v374_v9, %v419_v19 }
  0xb7   : > { %v451_v18 = vmul.f32 %v917_v17, %v431_v10  ;;  %v455_v27 = vmul.f32 %v917_v17, %v435_v25 }
  0xb8   : > { %v383_v1 = vpop.f32.mrf.mxu2  ;;  %v393_v7 = vpop.f32.mrf.mxu3 }
  0xb9   : > { %v384_v5 = vadd.f32 %v910_v12, %v383_v1  ;;  %484 = vadd.xlane.f32.xlu1 %v458_v63  ;;  %v394_v13 = vadd.f32 %v910_v12, %v393_v7 }
  0xba   : > { %482 = vadd.xlane.f32.xlu0 %v457_v2 }
  0xbb   : > { %v423_v8 = vmul.f32 0.01, %v384_v5  ;;  %vm407_vm12 = vcmp.ge.f32.partialorder %v384_v5, 0.0  ;;  %v427_v21 = vmul.f32 0.01, %v394_v13  ;;  %vm411_vm15 = vcmp.ge.f32.partialorder %v394_v13, 0.0 }
  0xbd   : > { %v439_v14 = vsel %vm407_vm12, %v384_v5, %v423_v8  ;;  %v443_v26 = vsel %vm411_vm15, %v394_v13, %v427_v21 }
  0xbe   : > { %v459_v16 = vmul.f32 %v917_v17, %v439_v14  ;;  %v463_v29 = vmul.f32 %v917_v17, %v443_v26 }
  0xc0   : > { %486 = vadd.xlane.f32.xlu2 %v459_v16 }
  0xc1   : > { %470 = vadd.xlane.f32.xlu1 %v451_v18 }
  0xc2   : > { %476 = vadd.xlane.f32.xlu0 %v454_v20 }
  0xc8   : > { %492 = vadd.xlane.f32.xlu2 %v462_v24 }
  0xc9   : > { %478 = vadd.xlane.f32.xlu1 %v455_v27 }
  0xca   : > { %494 = vadd.xlane.f32.xlu0 %v463_v29 }
  0xd1   : > { %490 = vadd.xlane.f32.xlu1 %v461_v31 }
 0x114   : > { %v473_v12 = vpop.xlane.xlu2 %472  ;;  %v465_v33 = vpop.xlane.xlu0 %464 }
 0x115   : > { %v502_v34 = vadd.f32 %v952_v32, %v473_v12  ;;  %v498_v35 = vadd.f32 %v952_v32, %v465_v33 }
 0x117   : > { %v518_v36 = vsub.f32 0.0, %v502_v34  ;;  %v514_v37 = vsub.f32 0.0, %v498_v35 }
 0x119   : > { %v538_v38 = vmul.f32 1.442695, %v518_v36  ;;  %v530_v39 = vmul.f32 1.442695, %v514_v37 }
 0x11b   : > { %768 = vpow2.f32 %v538_v38 }
 0x11c   : > { %770 = vpow2.f32 %v530_v39  ;;  %v481_v40 = vpop.xlane.xlu2 %480  ;;  %v489_v41 = vpop.xlane.xlu0 %488 }
 0x11d   : > { %v506_v17 = vadd.f32 %v952_v32, %v481_v40  ;;  %v510_v42 = vadd.f32 %v952_v32, %v489_v41 }
 0x11f   : > { %v522_v43 = vsub.f32 0.0, %v506_v17  ;;  %v526_v44 = vsub.f32 0.0, %v510_v42 }
 0x121   : > { %v769_v45 = vpop.eup %768  ;;  %v546_v46 = vmul.f32 1.442695, %v522_v43  ;;  %v554_v49 = vmul.f32 1.442695, %v526_v44 }
 0x122   : > { %v771_v47 = vpop.eup %770  ;;  %v566_v48 = vadd.f32 1.0, %v769_v45 }
 0x123   : > { %v562_v50 = vadd.f32 1.0, %v771_v47  ;;  %772 = vpow2.f32 %v546_v46 }
 0x124   : > { %774 = vrcp.f32 %v566_v48  ;;  %v475_v51 = vpop.xlane.xlu2 %474  ;;  %v469_v52 = vpop.xlane.xlu1 %468 }
 0x125   : > { %776 = vrcp.f32 %v562_v50  ;;  %v503_v53 = vadd.f32 %v952_v32, %v475_v51  ;;  %v500_v54 = vadd.f32 %v952_v32, %v469_v52  ;;  %v467_v55 = vpop.xlane.xlu0 %466 }
 0x126   : > { %778 = vpow2.f32 %v554_v49  ;;  %v499_v56 = vadd.f32 %v952_v32, %v467_v55 }
 0x127   : > { %v519_v57 = vsub.f32 0.0, %v503_v53  ;;  %v516_v58 = vsub.f32 0.0, %v500_v54 }
 0x128   : > { %v515_v59 = vsub.f32 0.0, %v499_v56 }
 0x129   : > { %v773_v60 = vpop.eup %772  ;;  %v540_v61 = vmul.f32 1.442695, %v519_v57  ;;  %v534_v62 = vmul.f32 1.442695, %v516_v58 }
 0x12a   : > { %v775_v63 = vpop.eup %774  ;;  %v570_v0 = vadd.f32 1.0, %v773_v60  ;;  %v532_v1 = vmul.f32 1.442695, %v515_v59 }
 0x12b   : > { %v777_v2 = vpop.eup %776  ;;  %599 = vst.msk [vmem:[%s965_s17 + $0x20] sm:$0xff] %vm594_vm1, %v775_v63  ;;  %780 = vpow2.f32 %v540_v61 }
 0x12c   : > { %v779_v3 = vpop.eup %778  ;;  %595 = vst.msk [vmem:[%s965_s17] sm:$0xff] %vm594_vm1, %v777_v2  ;;  %782 = vrcp.f32 %v570_v0  ;;  %v485_v4 = vpop.xlane.xlu1 %484 }
 0x12d   : > { %v574_v5 = vadd.f32 1.0, %v779_v3  ;;  %784 = vpow2.f32 %v534_v62  ;;  %v508_v6 = vadd.f32 %v952_v32, %v485_v4  ;;  %v483_v7 = vpop.xlane.xlu0 %482 }
 0x12e   : > { %786 = vpow2.f32 %v532_v1  ;;  %v507_v8 = vadd.f32 %v952_v32, %v483_v7 }
 0x12f   : > { %788 = vrcp.f32 %v574_v5  ;;  %v524_v9 = vsub.f32 0.0, %v508_v6 }
 0x130   : > { %v523_v10 = vsub.f32 0.0, %v507_v8 }
 0x131   : > { %v781_v11 = vpop.eup %780  ;;  %v550_v13 = vmul.f32 1.442695, %v524_v9 }
 0x132   : > { %v783_v14 = vpop.eup %782  ;;  %v567_v15 = vadd.f32 1.0, %v781_v11  ;;  %v548_v16 = vmul.f32 1.442695, %v523_v10 }
 0x133   : > { %v785_v18 = vpop.eup %784  ;;  %603 = vst.msk [vmem:[%s965_s17 + $0x40] sm:$0xff] %vm594_vm1, %v783_v14  ;;  %790 = vpow2.f32 %v550_v13  ;;  %v487_v19 = vpop.xlane.xlu2 %486 }
 0x134   : > { %v787_v20 = vpop.eup %786  ;;  %792 = vrcp.f32 %v567_v15  ;;  %v564_v21 = vadd.f32 1.0, %v785_v18  ;;  %v509_v22 = vadd.f32 %v952_v32, %v487_v19  ;;  %v471_v23 = vpop.xlane.xlu1 %470 }
 0x135   : > { %v789_v24 = vpop.eup %788  ;;  %v563_v25 = vadd.f32 1.0, %v787_v20  ;;  %794 = vpow2.f32 %v548_v16  ;;  %v501_v26 = vadd.f32 %v952_v32, %v471_v23  ;;  %v477_v27 = vpop.xlane.xlu0 %476 }
 0x136   : > { %607 = vst.msk [vmem:[%s965_s17 + $0x60] sm:$0xff] %vm594_vm1, %v789_v24  ;;  %796 = vrcp.f32 %v564_v21  ;;  %v525_v28 = vsub.f32 0.0, %v509_v22  ;;  %v504_v29 = vadd.f32 %v952_v32, %v477_v27 }
 0x137   : > { %798 = vrcp.f32 %v563_v25  ;;  %v517_v30 = vsub.f32 0.0, %v501_v26 }
 0x138   : > { %v552_v31 = vmul.f32 1.442695, %v525_v28  ;;  %v520_v12 = vsub.f32 0.0, %v504_v29 }
 0x139   : > { %v791_v33 = vpop.eup %790  ;;  %v536_v34 = vmul.f32 1.442695, %v517_v30 }
 0x13a   : > { %v793_v35 = vpop.eup %792  ;;  %v572_v36 = vadd.f32 1.0, %v791_v33  ;;  %800 = vpow2.f32 %v552_v31  ;;  %v542_v37 = vmul.f32 1.442695, %v520_v12 }
 0x13b   : > { %v795_v38 = vpop.eup %794  ;;  %600 = vst.msk [vmem:[%s965_s17 + $0x28] sm:$0xff] %vm594_vm1, %v793_v35  ;;  %802 = vpow2.f32 %v536_v34  ;;  %v493_v39 = vpop.xlane.xlu2 %492 }
 0x13c   : > { %v797_v40 = vpop.eup %796  ;;  %804 = vrcp.f32 %v572_v36  ;;  %v571_v41 = vadd.f32 1.0, %v795_v38  ;;  %v512_v17 = vadd.f32 %v952_v32, %v493_v39  ;;  %v479_v42 = vpop.xlane.xlu1 %478 }
 0x13d   : > { %v799_v43 = vpop.eup %798  ;;  %597 = vst.msk [vmem:[%s965_s17 + $0x10] sm:$0xff] %vm594_vm1, %v797_v40  ;;  %806 = vpow2.f32 %v542_v37  ;;  %v505_v44 = vadd.f32 %v952_v32, %v479_v42  ;;  %v495_v45 = vpop.xlane.xlu0 %494 }
 0x13e   : > { %596 = vst.msk [vmem:[%s965_s17 + $0x8] sm:$0xff] %vm594_vm1, %v799_v43  ;;  %808 = vrcp.f32 %v571_v41  ;;  %v528_v46 = vsub.f32 0.0, %v512_v17  ;;  %v513_v47 = vadd.f32 %v952_v32, %v495_v45 }
 0x13f   : > { %v521_v48 = vsub.f32 0.0, %v505_v44 }
 0x140   : > { %v801_v49 = vpop.eup %800  ;;  %v558_v50 = vmul.f32 1.442695, %v528_v46  ;;  %v529_v51 = vsub.f32 0.0, %v513_v47 }
 0x141   : > { %v803_v52 = vpop.eup %802  ;;  %v573_v53 = vadd.f32 1.0, %v801_v49  ;;  %v544_v54 = vmul.f32 1.442695, %v521_v48 }
 0x142   : > { %v805_v55 = vpop.eup %804  ;;  %v565_v56 = vadd.f32 1.0, %v803_v52  ;;  %810 = vpow2.f32 %v558_v50  ;;  %v560_v58 = vmul.f32 1.442695, %v529_v51 }
 0x143   : > { %v807_v57 = vpop.eup %806  ;;  %605 = vst.msk [vmem:[%s965_s17 + $0x50] sm:$0xff] %vm594_vm1, %v805_v55  ;;  %812 = vrcp.f32 %v573_v53 }
 0x144   : > { %v809_v59 = vpop.eup %808  ;;  %814 = vrcp.f32 %v565_v56  ;;  %v568_v60 = vadd.f32 1.0, %v807_v57  ;;  %v491_v61 = vpop.xlane.xlu1 %490 }
 0x145   : > { %604 = vst.msk [vmem:[%s965_s17 + $0x48] sm:$0xff] %vm594_vm1, %v809_v59  ;;  %816 = vpow2.f32 %v544_v54  ;;  %v511_v62 = vadd.f32 %v952_v32, %v491_v61 }
 0x146   : > { %818 = vrcp.f32 %v568_v60 }
 0x147   : > { %820 = vpow2.f32 %v560_v58  ;;  %v527_v63 = vsub.f32 0.0, %v511_v62 }
 0x148   : > { %v811_v0 = vpop.eup %810 }
 0x149   : > { %v813_v1 = vpop.eup %812  ;;  %v576_v2 = vadd.f32 1.0, %v811_v0  ;;  %v556_v3 = vmul.f32 1.442695, %v527_v63 }
 0x14a   : > { %v815_v4 = vpop.eup %814  ;;  %606 = vst.msk [vmem:[%s965_s17 + $0x58] sm:$0xff] %vm594_vm1, %v813_v1 }
 0x14b   : > { %v817_v5 = vpop.eup %816  ;;  %598 = vst.msk [vmem:[%s965_s17 + $0x18] sm:$0xff] %vm594_vm1, %v815_v4  ;;  %822 = vrcp.f32 %v576_v2 }
 0x14c   : > { %v819_v6 = vpop.eup %818  ;;  %v569_v32 = vadd.f32 1.0, %v817_v5  ;;  %824 = vpow2.f32 %v556_v3 }
 0x14d   : > { %v821_v7 = vpop.eup %820  ;;  %601 = vst.msk [vmem:[%s965_s17 + $0x30] sm:$0xff] %vm594_vm1, %v819_v6 }
 0x14e   : > { %826 = vrcp.f32 %v569_v32  ;;  %v577_v8 = vadd.f32 1.0, %v821_v7 }
 0x150   : > { %828 = vrcp.f32 %v577_v8 }
 0x151   : > { %v823_v9 = vpop.eup %822 }
 0x152   : > { %v825_v10 = vpop.eup %824  ;;  %609 = vst.msk [vmem:[%s965_s17 + $0x70] sm:$0xff] %vm594_vm1, %v823_v9 }
 0x153   : > { %v575_v11 = vadd.f32 1.0, %v825_v10 }
 0x154   : > { %v827_v13 = vpop.eup %826 }
 0x155   : > { %602 = vst.msk [vmem:[%s965_s17 + $0x38] sm:$0xff] %vm594_vm1, %v827_v13  ;;  %830 = vrcp.f32 %v575_v11 }
 0x156   : > { %v829_v14 = vpop.eup %828 }
 0x157   : > { %610 = vst.msk [vmem:[%s965_s17 + $0x78] sm:$0xff] %vm594_vm1, %v829_v14 }
 0x15b   : > { %v831_v15 = vpop.eup %830 }
 0x15c   : > { %608 = vst.msk [vmem:[%s965_s17 + $0x68] sm:$0xff] %vm594_vm1, %v831_v15 }
 0x15d PF: > { %s16_s20 = sadd.s32 1, %s838_s20  }
 0x15e   : > { %p13_p4 = scmp.ge.s32.totalorder %s16_s20, 4  }
 0x160   :  { %15 = sbr.rel (!%p13_p4) target bundleno = 2 (0x2), region = 70 }

</bundles_post_ra>
